<compile_context>
chip_gen: v7x
topology: tpu7x:2x2x1
jax: 0.10.0
libtpu: 0.0.40
codegen_flags: <defaults>
</compile_context>

<pallas_src>
import math

import jax
import jax.numpy as jnp
from jax.experimental import pallas as pl
from jax.experimental.pallas import tpu as pltpu


def _round_up(x, m):
    return ((x + m - 1) // m) * m


def _vmem_capacity_bytes():
    try:
        return int(pltpu.get_tpu_info().vmem_capacity_bytes)
    except Exception:
        return 64 * 1024 * 1024  # conservative fallback (v7x per-TensorCore VMEM)


def _transe_onehot_kernel(ph_ref, pr_ref, pt_ref, nh_ref, nr_ref, nt_ref,
                          ent_ref, rel_ref, pos_ref, neg_ref):
    """Tile-wide TransE: one-hot MXU gather + full-tile |h + r - t|.

    ph/pr/pt/nh/nr/nt: (TB, 1) int32 index blocks (VMEM).
    ent/rel:           (E_pad, D_pad) / (R_pad, D_pad) VMEM-resident tables.
    pos/neg:           (TB, D_pad) output blocks.
    """
    tb = pos_ref.shape[0]
    e_pad = ent_ref.shape[0]
    r_pad = rel_ref.shape[0]
    cdt = ent_ref.dtype

    # Hoisted once per tile (not per sample): iotas along the table-row axis.
    ent_iota = jax.lax.broadcasted_iota(jnp.int32, (tb, e_pad), 1)
    rel_iota = jax.lax.broadcasted_iota(jnp.int32, (tb, r_pad), 1)

    def triple(h_ref_, r_ref_, t_ref_):
        # Signed one-hot: +1 at the head id, -1 at the tail id (0 if equal),
        # so a single MXU matmul yields (h - t) exactly (one-hot entries are
        # exactly +/-1 and each row has at most two nonzeros, f32 accumulate).
        sel_ht = ((ent_iota == h_ref_[...]).astype(cdt)
                  - (ent_iota == t_ref_[...]).astype(cdt))
        sel_r = (rel_iota == r_ref_[...]).astype(cdt)
        ht = jnp.dot(sel_ht, ent_ref[...], preferred_element_type=jnp.float32)
        r = jnp.dot(sel_r, rel_ref[...], preferred_element_type=jnp.float32)
        return ht + r

    pos_ref[...] = jnp.abs(triple(ph_ref, pr_ref, pt_ref)).astype(pos_ref.dtype)
    neg_ref[...] = jnp.abs(triple(nh_ref, nr_ref, nt_ref)).astype(neg_ref.dtype)


def transe_forward(entity_emb, relation_emb, positive_samples, negative_samples,
                   mode="single", tile_rows=256):
    """Pallas TransE forward. Returns (pos_distances, neg_distances), each (B, D)."""
    if mode not in ("single", "double"):
        raise ValueError("Mode should be 'single' or 'double'.")
    # torch.norm over the size-1 chunk axis == elementwise |h + r - t| for
    # both p=1 and p=2, so 'single' and 'double' use the same kernel.

    num_entities, D = entity_emb.shape
    num_relations = relation_emb.shape[0]
    B = positive_samples.shape[0]
    dtype = entity_emb.dtype
    itemsize = jnp.dtype(dtype).itemsize

    # Lane-dense / MXU-aligned padding.  Padded table rows/cols are zeros and
    # are never selected (indices are clamped below).
    D_pad = _round_up(D, 128)
    E_pad = _round_up(num_entities, 128)
    R_pad = _round_up(num_relations, 128)

    ent = jnp.pad(entity_emb, ((0, E_pad - num_entities), (0, D_pad - D)))
    rel = jnp.pad(relation_emb, ((0, R_pad - num_relations), (0, D_pad - D)))

    # ---- generation-aware VMEM budgeting -----------------------------------
    vmem_cap = _vmem_capacity_bytes()
    budget = int(0.75 * vmem_cap)
    table_bytes = 2 * (E_pad + R_pad) * D_pad * itemsize      # 2x: pipeline buffers
    # Per sample-row of the tile: one-hot / iota temporaries (conservative),
    # double-buffered output rows, double-buffered index rows.
    per_row = (6 * max(E_pad, R_pad) * 4
               + 2 * 2 * D_pad * itemsize
               + 2 * 6 * 4)
    avail = budget - table_bytes
    if avail < 8 * per_row:
        # TODO(synk): large-table path — keep tables in HBM (memory_space=pl.ANY)
        # and do a double-buffered per-tile row-DMA gather driven by
        # scalar-prefetched indices, overlapped with compute of the previous tile.
        raise NotImplementedError(
            "Embedding tables too large for the VMEM-resident TransE kernel.")

    # Tile size: multiple of 8 sublanes; capped at ceil(B/2) so batches >= 16
    # give >= 2 grid steps (keeps both v7x TensorCores busy); capped by the
    # VMEM budget so the one-hot scratch always fits.
    tb_target = min(tile_rows, _round_up(max((B + 1) // 2, 1), 8))
    tb_vmem = max(8, (avail // per_row) // 8 * 8)
    TB = max(8, min(tb_target, tb_vmem, _round_up(B, 8)))
    B_pad = _round_up(B, TB)
    num_tiles = B_pad // TB

    # ---- index preparation ---------------------------------------------------
    pos = positive_samples.astype(jnp.int32)
    neg = negative_samples.astype(jnp.int32)
    ent_hi = num_entities - 1
    rel_hi = num_relations - 1

    def prep(col, hi):
        # Clamp (a bad id selects a valid row instead of erroring), pad the
        # batch (pad rows use id 0 and are stripped below), make a lane-0
        # column vector for the in-kernel one-hot comparison.
        c = jnp.clip(col, 0, hi)
        return jnp.pad(c, (0, B_pad - B)).reshape(B_pad, 1)

    idx_cols = (
        prep(pos[:, 0], ent_hi), prep(pos[:, 1], rel_hi), prep(pos[:, 2], ent_hi),
        prep(neg[:, 0], ent_hi), prep(neg[:, 1], rel_hi), prep(neg[:, 2], ent_hi),
    )

    # ---- pallas_call ---------------------------------------------------------
    idx_spec = pl.BlockSpec((TB, 1), lambda i: (i, 0))
    out_spec = pl.BlockSpec((TB, D_pad), lambda i: (i, 0))

    grid_spec = pltpu.PrefetchScalarGridSpec(
        num_scalar_prefetch=0,
        grid=(num_tiles,),
        in_specs=[idx_spec] * 6 + [
            # De-duplicated tables, fully resident in VMEM for the whole grid
            # (constant block index => fetched from HBM exactly once).
            pl.BlockSpec((E_pad, D_pad), lambda i: (0, 0)),
            pl.BlockSpec((R_pad, D_pad), lambda i: (0, 0)),
        ],
        out_specs=[out_spec, out_spec],
    )

    vmem_limit = int(min(budget,
                         max(table_bytes + TB * per_row + (4 << 20), 16 << 20)))

    pos_out, neg_out = pl.pallas_call(
        _transe_onehot_kernel,
        grid_spec=grid_spec,
        out_shape=(
            jax.ShapeDtypeStruct((B_pad, D_pad), dtype),
            jax.ShapeDtypeStruct((B_pad, D_pad), dtype),
        ),
        compiler_params=pltpu.CompilerParams(
            dimension_semantics=("parallel",),
            vmem_limit_bytes=vmem_limit,
        ),
    )(*idx_cols, ent, rel)

    # Strip padding (a no-op copy when B == B_pad and D == D_pad).
    return pos_out[:B, :D], neg_out[:B, :D]


def xavier_uniform(key, shape, dtype=jnp.float32):
    fan_in, fan_out = shape
    bound = math.sqrt(6.0 / (fan_in + fan_out))
    return jax.random.uniform(key, shape, dtype=dtype, minval=-bound, maxval=bound)


if __name__ == "__main__":
    num_entities, num_relations, embedding_dim = 64, 16, 32
    batch = 8

    key = jax.random.PRNGKey(0)
    (k_ent, k_rel,
     k_ph, k_pr, k_pt,
     k_nh, k_nr, k_nt) = jax.random.split(key, 8)

    # Deterministic parameter init mirroring nn.init.xavier_uniform_.
    entity_emb = xavier_uniform(k_ent, (num_entities, embedding_dim))
    relation_emb = xavier_uniform(k_rel, (num_relations, embedding_dim))

    positive_samples = jnp.concatenate([
        jax.random.randint(k_ph, (batch, 1), 0, num_entities),
        jax.random.randint(k_pr, (batch, 1), 0, num_relations),
        jax.random.randint(k_pt, (batch, 1), 0, num_entities),
    ], axis=1).astype(jnp.int32)

    negative_samples = jnp.concatenate([
        jax.random.randint(k_nh, (batch, 1), 0, num_entities),
        jax.random.randint(k_nr, (batch, 1), 0, num_relations),
        jax.random.randint(k_nt, (batch, 1), 0, num_entities),
    ], axis=1).astype(jnp.int32)

    # Pure-JAX reference (torch.norm over the size-1 chunk axis == |h + r - t|).
    def ref(samples):
        h = entity_emb[samples[:, 0]]
        r = relation_emb[samples[:, 1]]
        t = entity_emb[samples[:, 2]]
        return jnp.abs(h + r - t)

    ok = True
    for mode in ("single", "double"):
        pos_dist, neg_dist = transe_forward(
            entity_emb, relation_emb, positive_samples, negative_samples, mode=mode)
        jax.block_until_ready((pos_dist, neg_dist))
        ok &= pos_dist.shape == (batch, embedding_dim)
        ok &= neg_dist.shape == (batch, embedding_dim)
        ok &= bool(jnp.allclose(pos_dist, ref(positive_samples), atol=1e-5))
        ok &= bool(jnp.allclose(neg_dist, ref(negative_samples), atol=1e-5))

    assert ok
    print("KERNEL_OK")
</pallas_src>

<mosaic_0001>
module attributes {stable_mosaic.version = 11 : i64} {
  func.func @_transe_onehot_kernel(%arg0: i32, %arg1: memref<8x1xi32, #tpu.memory_space<vmem>>, %arg2: memref<8x1xi32, #tpu.memory_space<vmem>>, %arg3: memref<8x1xi32, #tpu.memory_space<vmem>>, %arg4: memref<8x1xi32, #tpu.memory_space<vmem>>, %arg5: memref<8x1xi32, #tpu.memory_space<vmem>>, %arg6: memref<8x1xi32, #tpu.memory_space<vmem>>, %arg7: memref<128x128xf32, #tpu.memory_space<vmem>>, %arg8: memref<128x128xf32, #tpu.memory_space<vmem>>, %arg9: memref<8x128xf32, #tpu.memory_space<vmem>>, %arg10: memref<8x128xf32, #tpu.memory_space<vmem>>) attributes {dimension_semantics = [#tpu.dimension_semantics<parallel>], iteration_bounds = array<i64: 1>, scalar_prefetch = 0 : i64, scratch_operands = 0 : i64, tpu.core_type = #tpu.core_type<tc>, window_params = [{transform_indices = @transform_0, window_bounds = array<i64: 8, 1>}, {transform_indices = @transform_1, window_bounds = array<i64: 8, 1>}, {transform_indices = @transform_2, window_bounds = array<i64: 8, 1>}, {transform_indices = @transform_3, window_bounds = array<i64: 8, 1>}, {transform_indices = @transform_4, window_bounds = array<i64: 8, 1>}, {transform_indices = @transform_5, window_bounds = array<i64: 8, 1>}, {pipeline_mode = #tpu.pipeline_mode<synchronous>, transform_indices = @transform_6, window_bounds = array<i64: 128, 128>}, {pipeline_mode = #tpu.pipeline_mode<synchronous>, transform_indices = @transform_7, window_bounds = array<i64: 128, 128>}, {transform_indices = @transform_8, window_bounds = array<i64: 8, 128>}, {transform_indices = @transform_9, window_bounds = array<i64: 8, 128>}]} {
    %0 = tpu.iota {dimensions = array<i32: 1>} : vector<8x128xi32>
    %1 = tpu.iota {dimensions = array<i32: 1>} : vector<8x128xi32>
    %c0 = arith.constant 0 : index
    %c0_0 = arith.constant 0 : index
    %2 = vector.load %arg1[%c0, %c0_0] : memref<8x1xi32, #tpu.memory_space<vmem>>, vector<8x1xi32>
    %3 = vector.broadcast %2 : vector<8x1xi32> to vector<8x128xi32>
    %4 = arith.cmpi eq, %0, %3 : vector<8x128xi32>
    %5 = arith.extui %4 : vector<8x128xi1> to vector<8x128xi32>
    %6 = arith.sitofp %5 : vector<8x128xi32> to vector<8x128xf32>
    %c0_1 = arith.constant 0 : index
    %c0_2 = arith.constant 0 : index
    %7 = vector.load %arg3[%c0_1, %c0_2] : memref<8x1xi32, #tpu.memory_space<vmem>>, vector<8x1xi32>
    %8 = vector.broadcast %7 : vector<8x1xi32> to vector<8x128xi32>
    %9 = arith.cmpi eq, %0, %8 : vector<8x128xi32>
    %10 = arith.extui %9 : vector<8x128xi1> to vector<8x128xi32>
    %11 = arith.sitofp %10 : vector<8x128xi32> to vector<8x128xf32>
    %12 = arith.subf %6, %11 : vector<8x128xf32>
    %c0_3 = arith.constant 0 : index
    %c0_4 = arith.constant 0 : index
    %13 = vector.load %arg2[%c0_3, %c0_4] : memref<8x1xi32, #tpu.memory_space<vmem>>, vector<8x1xi32>
    %14 = vector.broadcast %13 : vector<8x1xi32> to vector<8x128xi32>
    %15 = arith.cmpi eq, %1, %14 : vector<8x128xi32>
    %16 = arith.extui %15 : vector<8x128xi1> to vector<8x128xi32>
    %17 = arith.sitofp %16 : vector<8x128xi32> to vector<8x128xf32>
    %c0_5 = arith.constant 0 : index
    %c0_6 = arith.constant 0 : index
    %18 = vector.load %arg7[%c0_5, %c0_6] : memref<128x128xf32, #tpu.memory_space<vmem>>, vector<128x128xf32>
    %cst = arith.constant dense<0.000000e+00> : vector<8x128xf32>
    %19 = tpu.matmul %12, %18, %cst {dimension_numbers = #tpu.dot_dimension_numbers<[1], [0], [0], [1], [0, 0, 1, 1], [], []>} : vector<8x128xf32>, vector<128x128xf32>, vector<8x128xf32> -> vector<8x128xf32>
    %c0_7 = arith.constant 0 : index
    %c0_8 = arith.constant 0 : index
    %20 = vector.load %arg8[%c0_7, %c0_8] : memref<128x128xf32, #tpu.memory_space<vmem>>, vector<128x128xf32>
    %cst_9 = arith.constant dense<0.000000e+00> : vector<8x128xf32>
    %21 = tpu.matmul %17, %20, %cst_9 {dimension_numbers = #tpu.dot_dimension_numbers<[1], [0], [0], [1], [0, 0, 1, 1], [], []>} : vector<8x128xf32>, vector<128x128xf32>, vector<8x128xf32> -> vector<8x128xf32>
    %22 = arith.addf %19, %21 : vector<8x128xf32>
    %23 = math.absf %22 : vector<8x128xf32>
    %c0_10 = arith.constant 0 : index
    %c0_11 = arith.constant 0 : index
    %24 = vector.load %arg9[%c0_10, %c0_11] : memref<8x128xf32, #tpu.memory_space<vmem>>, vector<8x128xf32>
    tpu.vector_store %arg9[%c0_10, %c0_11], %23 {strides = array<i32>} : memref<8x128xf32, #tpu.memory_space<vmem>>, vector<8x128xf32>,
    %c0_12 = arith.constant 0 : index
    %c0_13 = arith.constant 0 : index
    %25 = vector.load %arg4[%c0_12, %c0_13] : memref<8x1xi32, #tpu.memory_space<vmem>>, vector<8x1xi32>
    %26 = vector.broadcast %25 : vector<8x1xi32> to vector<8x128xi32>
    %27 = arith.cmpi eq, %0, %26 : vector<8x128xi32>
    %28 = arith.extui %27 : vector<8x128xi1> to vector<8x128xi32>
    %29 = arith.sitofp %28 : vector<8x128xi32> to vector<8x128xf32>
    %c0_14 = arith.constant 0 : index
    %c0_15 = arith.constant 0 : index
    %30 = vector.load %arg6[%c0_14, %c0_15] : memref<8x1xi32, #tpu.memory_space<vmem>>, vector<8x1xi32>
    %31 = vector.broadcast %30 : vector<8x1xi32> to vector<8x128xi32>
    %32 = arith.cmpi eq, %0, %31 : vector<8x128xi32>
    %33 = arith.extui %32 : vector<8x128xi1> to vector<8x128xi32>
    %34 = arith.sitofp %33 : vector<8x128xi32> to vector<8x128xf32>
    %35 = arith.subf %29, %34 : vector<8x128xf32>
    %c0_16 = arith.constant 0 : index
    %c0_17 = arith.constant 0 : index
    %36 = vector.load %arg5[%c0_16, %c0_17] : memref<8x1xi32, #tpu.memory_space<vmem>>, vector<8x1xi32>
    %37 = vector.broadcast %36 : vector<8x1xi32> to vector<8x128xi32>
    %38 = arith.cmpi eq, %1, %37 : vector<8x128xi32>
    %39 = arith.extui %38 : vector<8x128xi1> to vector<8x128xi32>
    %40 = arith.sitofp %39 : vector<8x128xi32> to vector<8x128xf32>
    %c0_18 = arith.constant 0 : index
    %c0_19 = arith.constant 0 : index
    %41 = vector.load %arg7[%c0_18, %c0_19] : memref<128x128xf32, #tpu.memory_space<vmem>>, vector<128x128xf32>
    %cst_20 = arith.constant dense<0.000000e+00> : vector<8x128xf32>
    %42 = tpu.matmul %35, %41, %cst_20 {dimension_numbers = #tpu.dot_dimension_numbers<[1], [0], [0], [1], [0, 0, 1, 1], [], []>} : vector<8x128xf32>, vector<128x128xf32>, vector<8x128xf32> -> vector<8x128xf32>
    %c0_21 = arith.constant 0 : index
    %c0_22 = arith.constant 0 : index
    %43 = vector.load %arg8[%c0_21, %c0_22] : memref<128x128xf32, #tpu.memory_space<vmem>>, vector<128x128xf32>
    %cst_23 = arith.constant dense<0.000000e+00> : vector<8x128xf32>
    %44 = tpu.matmul %40, %43, %cst_23 {dimension_numbers = #tpu.dot_dimension_numbers<[1], [0], [0], [1], [0, 0, 1, 1], [], []>} : vector<8x128xf32>, vector<128x128xf32>, vector<8x128xf32> -> vector<8x128xf32>
    %45 = arith.addf %42, %44 : vector<8x128xf32>
    %46 = math.absf %45 : vector<8x128xf32>
    %c0_24 = arith.constant 0 : index
    %c0_25 = arith.constant 0 : index
    %47 = vector.load %arg10[%c0_24, %c0_25] : memref<8x128xf32, #tpu.memory_space<vmem>>, vector<8x128xf32>
    tpu.vector_store %arg10[%c0_24, %c0_25], %46 {strides = array<i32>} : memref<8x128xf32, #tpu.memory_space<vmem>>, vector<8x128xf32>,
    return
  }
  func.func @transform_0(%arg0: i32) -> (i32, i32) {
    %c0_i32 = arith.constant 0 : i32
    %c0_i32_0 = arith.constant 0 : i32
    return %arg0, %c0_i32 : i32, i32
  }
  func.func @transform_1(%arg0: i32) -> (i32, i32) {
    %c0_i32 = arith.constant 0 : i32
    %c0_i32_0 = arith.constant 0 : i32
    return %arg0, %c0_i32 : i32, i32
  }
  func.func @transform_2(%arg0: i32) -> (i32, i32) {
    %c0_i32 = arith.constant 0 : i32
    %c0_i32_0 = arith.constant 0 : i32
    return %arg0, %c0_i32 : i32, i32
  }
  func.func @transform_3(%arg0: i32) -> (i32, i32) {
    %c0_i32 = arith.constant 0 : i32
    %c0_i32_0 = arith.constant 0 : i32
    return %arg0, %c0_i32 : i32, i32
  }
  func.func @transform_4(%arg0: i32) -> (i32, i32) {
    %c0_i32 = arith.constant 0 : i32
    %c0_i32_0 = arith.constant 0 : i32
    return %arg0, %c0_i32 : i32, i32
  }
  func.func @transform_5(%arg0: i32) -> (i32, i32) {
    %c0_i32 = arith.constant 0 : i32
    %c0_i32_0 = arith.constant 0 : i32
    return %arg0, %c0_i32 : i32, i32
  }
  func.func @transform_6(%arg0: i32) -> (i32, i32) {
    %c0_i32 = arith.constant 0 : i32
    %c0_i32_0 = arith.constant 0 : i32
    %c0_i32_1 = arith.constant 0 : i32
    return %c0_i32, %c0_i32_0 : i32, i32
  }
  func.func @transform_7(%arg0: i32) -> (i32, i32) {
    %c0_i32 = arith.constant 0 : i32
    %c0_i32_0 = arith.constant 0 : i32
    %c0_i32_1 = arith.constant 0 : i32
    return %c0_i32, %c0_i32_0 : i32, i32
  }
  func.func @transform_8(%arg0: i32) -> (i32, i32) {
    %c0_i32 = arith.constant 0 : i32
    %c0_i32_0 = arith.constant 0 : i32
    return %arg0, %c0_i32 : i32, i32
  }
  func.func @transform_9(%arg0: i32) -> (i32, i32) {
    %c0_i32 = arith.constant 0 : i32
    %c0_i32_0 = arith.constant 0 : i32
    return %arg0, %c0_i32 : i32, i32
  }
}

</mosaic_0001>

<bundles_post_ra>
// kernel: tpu_custom_call.1
= control target key start
LH: loop header
LB: loop body
LE: loop exit
PB: predicated region body
PF: predicated region fallthrough
CT: control target
= control target key end

     0   :  { %15 = vsyncpa [#allocation3], 0  ;;  %s1089_s0 = inlined_call_operand.vmem [shape: s32[8,1], index: 0, kind: input, shape index: {}]   ;;  %s1090_s1 = inlined_call_operand.vmem [shape: s32[8,1], index: 1, kind: input, shape index: {}]   ;;  %s1091_s2 = inlined_call_operand.vmem [shape: s32[8,1], index: 2, kind: input, shape index: {}]   ;;  %s1092_s3 = inlined_call_operand.vmem [shape: s32[8,1], index: 3, kind: input, shape index: {}]   ;;  %s1093_s4 = inlined_call_operand.vmem [shape: s32[8,1], index: 4, kind: input, shape index: {}]   ;;  %s1094_s5 = inlined_call_operand.vmem [shape: s32[8,1], index: 5, kind: input, shape index: {}]   ;;  %s1095_s6 = inlined_call_operand.hbm [shape: f32[128,128], index: 6, kind: input, shape index: {}]   ;;  %s1096_s7 = inlined_call_operand.hbm [shape: f32[128,128], index: 7, kind: input, shape index: {}]   ;;  %s1097_s8 = inlined_call_operand.hbm [shape: f32[8,128], index: 8, kind: output, shape index: {0}]   ;;  %s1098_s9 = inlined_call_operand.hbm [shape: f32[8,128], index: 9, kind: output, shape index: {1}]  }
   0x1   :  { %16 = vsyncpa [#allocation6], 0 }
   0x2   :  { %17 = vsyncpa [#allocation4], 0 }
   0x3   :  { %18 = vsyncpa [#allocation9], 0  ;;  %s910_s30 = smov [#allocation2]   ;;  %s814_s13 = scalar_lea.hbm %s1095_s6, 2048 }
   0x4   :  { %s36_s10 = sshll.u32 %s910_s30, 4  ;;  %p815_p0 = scmp.ne.s32.totalorder %s1095_s6, %s814_s13  ;;  %s37_s10 = int_to_ptr.vmem [resolvable:$true] %s36_s10 }
   0x5   :  { %p818_p1 = scmp.lt.u32.totalorder %s814_s13, %s1095_s6 }
   0x7   :  { %p820_p2 = pnand %p818_p1, %p815_p0 }
   0x9   :  { %823 = shalt.err (!%p820_p2)
}
   0xa   :  { %s824_s18 = scalar_lea.vmem %s37_s10, 2048  ;;  %p829_p4 = scmp.lt.s32.totalorder %s37_s10, %s37_s10 }
   0xb   :  { %p825_p3 = scmp.ne.s32.totalorder %s37_s10, %s824_s18  ;;  %p830_p5 = scmp.lt.s32.totalorder %s824_s18, %s824_s18 }
   0xd   :  { %p831_p6 = por %p830_p5, %p829_p4 }
   0xf   :  { %p832_p7 = pnand %p831_p6, %p825_p3 }
  0x11   :  { %835 = shalt.err (!%p832_p7)
}
  0x12   :  { %s911_s19 = smov 128   ;;  %s912_s20 = smov 8  }
  0x13   :  { %42 = dma.hbm_to_vmem [thread:$0]  %s1095_s6, 2048, %s37_s10, [#allocation3], %s911_s19, %s911_s19, %s912_s20  }
  0x14   :  { %s913_s23 = smov [#allocation5]   ;;  %s836_s27 = scalar_lea.hbm %s1096_s7, 2048 }
  0x15   :  { %s48_s24 = sshll.u32 %s913_s23, 4  ;;  %p837_p8 = scmp.ne.s32.totalorder %s1096_s7, %s836_s27  ;;  %s49_s24 = int_to_ptr.vmem [resolvable:$true] %s48_s24 }
  0x16   :  { %p840_p9 = scmp.lt.u32.totalorder %s836_s27, %s1096_s7 }
  0x18   :  { %p842_p10 = pnand %p840_p9, %p837_p8 }
  0x1a   :  { %845 = shalt.err (!%p842_p10)
}
  0x1b   :  { %s846_s12 = scalar_lea.vmem %s49_s24, 2048  ;;  %p851_p12 = scmp.lt.s32.totalorder %s49_s24, %s49_s24 }
  0x1c   :  { %p847_p11 = scmp.ne.s32.totalorder %s49_s24, %s846_s12  ;;  %p852_p13 = scmp.lt.s32.totalorder %s846_s12, %s846_s12 }
  0x1e   :  { %p853_p0 = por %p852_p13, %p851_p12 }
  0x20   :  { %p854_p1 = pnand %p853_p0, %p847_p11 }
  0x22   :  { %857 = shalt.err (!%p854_p1)
}
  0x23   :  { %54 = dma.hbm_to_vmem [thread:$0]  %s1096_s7, 2048, %s49_s24, [#allocation6], %s911_s19, %s911_s19, %s912_s20  }
  0x24   :  { %902 = dma.done.wait [#allocation3], 2048  }
  0x25   :  { %903 = vsyncadd [#allocation3], 4294965248 }
  0x26   :  { %904 = dma.done.wait [#allocation6], 2048  }
  0x27   :  { %905 = vsyncadd [#allocation6], 4294965248  ;;  %v914_v0 = vmov 0   ;;  %v915_v1 = vmov 0.0|0.0   ;;  %v78_v2 = vld [vmem:[%s1090_s1] sm:$0xff]  ;;  %v101_v6 = vld [vmem:[#allocation5] sm:$0xff]  ;;  %v61_v33 = vlaneseq }
  0x28   :  { %813 = vset.pattern.permute.xlu1 %v914_v0  ;;  %812 = vset.pattern.permute.xlu0 %v914_v0  ;;  %v63_v3 = vld [vmem:[%s1089_s0] sm:$0xff]  ;;  %vm916_vm0 = vmmov 0   ;;  %v917_v8 = vmov 0.0   ;;  %v103_v10 = vld [vmem:[#allocation5 + $0x10] sm:$0xff]  ;;  %v104_v11 = vld [vmem:[#allocation5 + $0x18] sm:$0xff]  ;;  %v918_v41 = vmov 1.0  }
  0x29   :  { %701 = vmatprep.subr.bf16.mxu0 %v915_v1  ;;  %749 = vmatprep.subr.bf16.mxu1 %v915_v1  ;;  %v274_v4 = vld [vmem:[%s1093_s4] sm:$0xff]  ;;  %v705_v14 = vpack.c.bf16 %v104_v11, %v103_v10  ;;  %v105_v15 = vld [vmem:[#allocation5 + $0x20] sm:$0xff]  ;;  %v107_v18 = vld [vmem:[#allocation5 + $0x30] sm:$0xff]  ;;  %v1035_v36 = vand.u32 127, %v61_v33  ;;  %s920_s20 = smov [#allocation8]  }
  0x2a   :  { %80 = vperm.xlu0 %812, %v78_v2   ;;  %65 = vperm.xlu1 %813, %v63_v3   ;;  %v70_v5 = vld [vmem:[%s1091_s2] sm:$0xff]  ;;  %v108_v19 = vld [vmem:[#allocation5 + $0x38] sm:$0xff]  ;;  %v109_v21 = vld [vmem:[#allocation5 + $0x40] sm:$0xff]  ;;  %s471_s21 = sshll.u32 %s920_s20, 4  ;;  %s472_s21 = int_to_ptr.vmem [resolvable:$true] %s471_s21 }
  0x2b   :  { %v102_v7 = vld [vmem:[#allocation5 + $0x8] sm:$0xff]  ;;  %593 = vmatprep.mubr.msk.f32.mxu0 %vm916_vm0, %v917_v8  ;;  %663 = vmatprep.mubr.msk.f32.mxu1 %vm916_vm0, %v917_v8  ;;  %v711_v20 = vpack.c.bf16 %v108_v19, %v107_v18  ;;  %v111_v24 = vld [vmem:[#allocation5 + $0x50] sm:$0xff]  ;;  %v112_v25 = vld [vmem:[#allocation5 + $0x58] sm:$0xff] }
  0x2c   :  { %v702_v9 = vpack.c.bf16 %v102_v7, %v101_v6  ;;  %v259_v12 = vld [vmem:[%s1092_s3] sm:$0xff]  ;;  %v717_v26 = vpack.c.bf16 %v112_v25, %v111_v24  ;;  %v113_v27 = vld [vmem:[#allocation5 + $0x60] sm:$0xff]  ;;  %v115_v30 = vld [vmem:[#allocation5 + $0x70] sm:$0xff]  ;;  %s919_s3 = smov [#allocation7]  }
  0x2d   :  { %v266_v13 = vld [vmem:[%s1094_s5] sm:$0xff]  ;;  %v116_v31 = vld [vmem:[#allocation5 + $0x78] sm:$0xff]  ;;  %v85_v34 = vld [vmem:[#allocation2] sm:$0xff]  ;;  %s461_s5 = sshll.u32 %s919_s3, 4  ;;  %s462_s5 = int_to_ptr.vmem [resolvable:$true] %s461_s5 }
  0x2e   :  { %276 = vperm.xlu0 %812, %v274_v4   ;;  %72 = vperm.xlu1 %813, %v70_v5   ;;  %v106_v16 = vld [vmem:[#allocation5 + $0x28] sm:$0xff]  ;;  %v723_v32 = vpack.c.bf16 %v116_v31, %v115_v30  ;;  %v87_v39 = vld [vmem:[#allocation2 + $0x10] sm:$0xff]  ;;  %v88_v40 = vld [vmem:[#allocation2 + $0x18] sm:$0xff]  ;;  %s858_s22 = scalar_lea.vmem %s462_s5, 128  ;;  %p863_p3 = scmp.lt.s32.totalorder %s462_s5, %s462_s5 }
  0x2f   :  { %703 = vmatpush3.bf16.msra.mxu0 %v702_v9  ;;  %751 = vmatpush3.bf16.msra.mxu1 %v702_v9  ;;  %v708_v17 = vpack.c.bf16 %v106_v16, %v105_v15  ;;  %v110_v22 = vld [vmem:[#allocation5 + $0x48] sm:$0xff]  ;;  %v729_v42 = vpack.c.bf16 %v88_v40, %v87_v39  ;;  %v89_v44 = vld [vmem:[#allocation2 + $0x20] sm:$0xff]  ;;  %v91_v47 = vld [vmem:[#allocation2 + $0x30] sm:$0xff]  ;;  %p859_p2 = scmp.ne.s32.totalorder %s462_s5, %s858_s22  ;;  %p864_p4 = scmp.lt.s32.totalorder %s858_s22, %s858_s22 }
  0x30   :  { %704 = vmatprep.subr.bf16.mxu0 %v915_v1  ;;  %752 = vmatprep.subr.bf16.mxu1 %v915_v1  ;;  %v714_v23 = vpack.c.bf16 %v110_v22, %v109_v21  ;;  %v114_v28 = vld [vmem:[#allocation5 + $0x68] sm:$0xff]  ;;  %v92_v48 = vld [vmem:[#allocation2 + $0x38] sm:$0xff]  ;;  %v93_v50 = vld [vmem:[#allocation2 + $0x40] sm:$0xff] }
  0x31   :  { %v720_v29 = vpack.c.bf16 %v114_v28, %v113_v27  ;;  %v86_v35 = vld [vmem:[#allocation2 + $0x8] sm:$0xff]  ;;  %v735_v49 = vpack.c.bf16 %v92_v48, %v91_v47  ;;  %v95_v54 = vld [vmem:[#allocation2 + $0x50] sm:$0xff]  ;;  %v96_v55 = vld [vmem:[#allocation2 + $0x58] sm:$0xff]  ;;  %p865_p5 = por %p864_p4, %p863_p3 }
  0x32   :  { %261 = vperm.xlu0 %812, %v259_v12   ;;  %268 = vperm.xlu1 %813, %v266_v13   ;;  %v726_v37 = vpack.c.bf16 %v86_v35, %v85_v34  ;;  %v90_v45 = vld [vmem:[#allocation2 + $0x28] sm:$0xff]  ;;  %v741_v56 = vpack.c.bf16 %v96_v55, %v95_v54  ;;  %v97_v57 = vld [vmem:[#allocation2 + $0x60] sm:$0xff]  ;;  %v99_v61 = vld [vmem:[#allocation2 + $0x70] sm:$0xff] }
  0x33   :  { %706 = vmatpush3.bf16.msra.mxu0 %v705_v14  ;;  %754 = vmatpush3.bf16.msra.mxu1 %v705_v14  ;;  %v732_v46 = vpack.c.bf16 %v90_v45, %v89_v44  ;;  %v94_v51 = vld [vmem:[#allocation2 + $0x48] sm:$0xff]  ;;  %v100_v62 = vld [vmem:[#allocation2 + $0x78] sm:$0xff]  ;;  %p866_p6 = pnand %p865_p5, %p859_p2 }
  0x34   :  { %707 = vmatprep.subr.bf16.mxu0 %v915_v1  ;;  %755 = vmatprep.subr.bf16.mxu1 %v915_v1  ;;  %v738_v53 = vpack.c.bf16 %v94_v51, %v93_v50  ;;  %v98_v58 = vld [vmem:[#allocation2 + $0x68] sm:$0xff]  ;;  %v747_v2 = vpack.c.bf16 %v100_v62, %v99_v61 }
  0x35   :  { %v744_v60 = vpack.c.bf16 %v98_v58, %v97_v57 }
  0x37   :  { %709 = vmatpush3.bf16.msra.mxu0 %v708_v17  ;;  %757 = vmatpush3.bf16.msra.mxu1 %v708_v17 }
  0x38   :  { %710 = vmatprep.subr.bf16.mxu0 %v915_v1  ;;  %758 = vmatprep.subr.bf16.mxu1 %v915_v1 }
  0x3b   :  { %712 = vmatpush3.bf16.msra.mxu0 %v711_v20  ;;  %760 = vmatpush3.bf16.msra.mxu1 %v711_v20 }
  0x3c   :  { %713 = vmatprep.subr.bf16.mxu0 %v915_v1  ;;  %761 = vmatprep.subr.bf16.mxu1 %v915_v1 }
  0x3f   :  { %715 = vmatpush3.bf16.msra.mxu0 %v714_v23  ;;  %763 = vmatpush3.bf16.msra.mxu1 %v714_v23 }
  0x40   :  { %716 = vmatprep.subr.bf16.mxu0 %v915_v1  ;;  %764 = vmatprep.subr.bf16.mxu1 %v915_v1 }
  0x43   :  { %718 = vmatpush3.bf16.msra.mxu0 %v717_v26  ;;  %766 = vmatpush3.bf16.msra.mxu1 %v717_v26 }
  0x44   :  { %719 = vmatprep.subr.bf16.mxu0 %v915_v1  ;;  %767 = vmatprep.subr.bf16.mxu1 %v915_v1 }
  0x47   :  { %721 = vmatpush3.bf16.msra.mxu0 %v720_v29  ;;  %769 = vmatpush3.bf16.msra.mxu1 %v720_v29 }
  0x48   :  { %722 = vmatprep.subr.bf16.mxu0 %v915_v1  ;;  %770 = vmatprep.subr.bf16.mxu1 %v915_v1 }
  0x4b   :  { %724 = vmatpush3.bf16.msra.mxu0 %v723_v32  ;;  %772 = vmatpush3.bf16.msra.mxu1 %v723_v32 }
  0x4c   :  { %725 = vmatprep.subr.bf16.mxu0 %v915_v1  ;;  %773 = vmatprep.subr.bf16.mxu1 %v915_v1 }
  0xa9   :  { %v81_v38 = vpop.permute.xlu0 %80  ;;  %v66_v52 = vpop.permute.xlu1 %65 }
  0xaa   :  { %vm82_vm1 = vcmp.eq.s32.totalorder %v1035_v36, %v81_v38  ;;  %vm67_vm3 = vcmp.eq.s32.totalorder %v1035_v36, %v66_v52 }
  0xab   :  { %594 = vmatmul.mubr.msk.f32.vlgmr.msra.gmra.mrb[0].mxu0 %vm82_vm1, %v918_v41  ;;  %v485_v3 = vsel %vm67_vm3, 1.0, %v917_v8 }
  0xac   :  { %727 = vmatpush3.bf16.msra.mxu0 %v726_v37  ;;  %628 = vmatprep.mubr.msk.f32.mxu0 %vm916_vm0, %v917_v8 }
  0xad   :  { %v277_v43 = vpop.permute.xlu0 %276  ;;  %728 = vmatprep.subr.bf16.mxu0 %v915_v1  ;;  %v73_v59 = vpop.permute.xlu1 %72 }
  0xae   :  { %vm278_vm2 = vcmp.eq.s32.totalorder %v1035_v36, %v277_v43  ;;  %vm74_vm4 = vcmp.eq.s32.totalorder %v1035_v36, %v73_v59 }
  0xaf   :  { %664 = vmatmul.mubr.msk.f32.vlgmr.msra.gmra.mrb[0].mxu1 %vm278_vm2, %v918_v41  ;;  %v486_v4 = vsel %vm74_vm4, 1.0, %v917_v8 }
  0xb0   :  { %730 = vmatpush3.bf16.msra.mxu0 %v729_v42  ;;  %775 = vmatpush3.bf16.msra.mxu1 %v726_v37  ;;  %v77_v5 = vsub.f32 %v485_v3, %v486_v4 }
  0xb1   :  { %731 = vmatprep.subr.bf16.mxu0 %v915_v1  ;;  %776 = vmatprep.subr.bf16.mxu1 %v915_v1  ;;  %v262_v63 = vpop.permute.xlu0 %261  ;;  %v269_v0 = vpop.permute.xlu1 %268 }
  0xb2   :  { %698 = vmatprep.mubr.msk.f32.mxu1 %vm916_vm0, %v917_v8  ;;  %vm263_vm5 = vcmp.eq.s32.totalorder %v1035_v36, %v262_v63  ;;  %vm270_vm6 = vcmp.eq.s32.totalorder %v1035_v36, %v269_v0 }
  0xb3   :  { %v489_v6 = vsel %vm263_vm5, 1.0, %v917_v8  ;;  %v490_v7 = vsel %vm270_vm6, 1.0, %v917_v8 }
  0xb4   :  { %733 = vmatpush3.bf16.msra.mxu0 %v732_v46  ;;  %778 = vmatpush3.bf16.msra.mxu1 %v729_v42  ;;  %v273_v9 = vsub.f32 %v489_v6, %v490_v7 }
  0xb5   :  { %734 = vmatprep.subr.bf16.mxu0 %v915_v1  ;;  %779 = vmatprep.subr.bf16.mxu1 %v915_v1 }
  0xb8   :  { %736 = vmatpush3.bf16.msra.mxu0 %v735_v49  ;;  %781 = vmatpush3.bf16.msra.mxu1 %v732_v46 }
  0xb9   :  { %737 = vmatprep.subr.bf16.mxu0 %v915_v1  ;;  %782 = vmatprep.subr.bf16.mxu1 %v915_v1 }
  0xbc   :  { %739 = vmatpush3.bf16.msra.mxu0 %v738_v53  ;;  %784 = vmatpush3.bf16.msra.mxu1 %v735_v49 }
  0xbd   :  { %740 = vmatprep.subr.bf16.mxu0 %v915_v1  ;;  %785 = vmatprep.subr.bf16.mxu1 %v915_v1 }
  0xc0   :  { %742 = vmatpush3.bf16.msra.mxu0 %v741_v56  ;;  %787 = vmatpush3.bf16.msra.mxu1 %v738_v53 }
  0xc1   :  { %743 = vmatprep.subr.bf16.mxu0 %v915_v1  ;;  %788 = vmatprep.subr.bf16.mxu1 %v915_v1 }
  0xc4   :  { %745 = vmatpush3.bf16.msra.mxu0 %v744_v60  ;;  %790 = vmatpush3.bf16.msra.mxu1 %v741_v56 }
  0xc5   :  { %746 = vmatprep.subr.bf16.mxu0 %v915_v1  ;;  %791 = vmatprep.subr.bf16.mxu1 %v915_v1 }
  0xc8   :  { %748 = vmatpush3.bf16.msra.mxu0 %v747_v2  ;;  %793 = vmatpush3.bf16.msra.mxu1 %v744_v60 }
  0xc9   :  { %794 = vmatprep.subr.bf16.mxu1 %v915_v1 }
  0xcb   :  { %629 = vmatmul.mubr.f32.vlgmr.msra.gmra.mrb[0].mxu0 %v77_v5 }
  0xcc   :  { %796 = vmatpush3.bf16.msra.mxu1 %v747_v2 }
  0xcf   :  { %699 = vmatmul.mubr.f32.vlgmr.msra.gmra.mrb[0].mxu1 %v273_v9 }
 0x19e   :  { %v253_v10 = vpop.f32.mrb[0].mxu0 }
 0x19f   :  { %v257_v11 = vand.u32 2147483647, %v253_v10  ;;  %v630_v12 = vpop.f32.mrb[1].mxu0 }
 0x1a1   :  { %258 = vst [vmem:[#allocation7] sm:$0xff] %v257_v11 }
 0x1a2   :  { %v449_v13 = vpop.f32.mrb[0].mxu1 }
 0x1a3   :  { %869 = shalt.err (!%p866_p6)
}
 0x1a4   :  { %s870_s25 = scalar_lea.hbm %s1097_s8, 128 }
 0x1a5   :  { %p871_p7 = scmp.ne.s32.totalorder %s1097_s8, %s870_s25  ;;  %p874_p8 = scmp.lt.u32.totalorder %s870_s25, %s1097_s8 }
 0x1a7   :  { %p876_p9 = pnand %p874_p8, %p871_p7 }
 0x1a9   :  { %879 = shalt.err (!%p876_p9)
}
 0x1aa   :  { %464 = dma.vmem_to_hbm [thread:$0]  %s462_s5, 128, %s1097_s8, [#allocation4]   ;;  %v453_v1 = vand.u32 2147483647, %v449_v13  ;;  %v700_v8 = vpop.f32.mrb[1].mxu1 }
 0x1ab   :  { %s880_s12 = scalar_lea.vmem %s472_s21, 128  ;;  %p885_p11 = scmp.lt.s32.totalorder %s472_s21, %s472_s21 }
 0x1ac   :  { %454 = vst [vmem:[#allocation8] sm:$0xff] %v453_v1  ;;  %p881_p10 = scmp.ne.s32.totalorder %s472_s21, %s880_s12  ;;  %p886_p12 = scmp.lt.s32.totalorder %s880_s12, %s880_s12 }
 0x1ae   :  { %p887_p13 = por %p886_p12, %p885_p11 }
 0x1b0   :  { %p888_p0 = pnand %p887_p13, %p881_p10 }
 0x1b2   :  { %891 = shalt.err (!%p888_p0)
}
 0x1b3   :  { %s892_s13 = scalar_lea.hbm %s1098_s9, 128 }
 0x1b4   :  { %p893_p1 = scmp.ne.s32.totalorder %s1098_s9, %s892_s13  ;;  %p896_p2 = scmp.lt.u32.totalorder %s892_s13, %s1098_s9 }
 0x1b6   :  { %p898_p3 = pnand %p896_p2, %p893_p1 }
 0x1b8   :  { %901 = shalt.err (!%p898_p3)
}
 0x1b9   :  { %474 = dma.vmem_to_hbm [thread:$0]  %s472_s21, 128, %s1098_s9, [#allocation9]  }
 0x1ba   :  { %906 = dma.done.wait [#allocation4], 128  }
 0x1bb   :  { %907 = vsyncadd [#allocation4], 4294967168 }
 0x1bc   :  { %908 = dma.done.wait [#allocation9], 128  }
 0x1bd   :  { %909 = vsyncadd [#allocation9], 4294967168 }
 0x1be   :  { %481 = vsyncpa [#allocation3], 1 }
 0x1bf   :  { %482 = vsyncpa [#allocation6], 1 }
 0x1c0   :  { %483 = vsyncpa [#allocation4], 1 }
 0x1c1   :  { %484 = vsyncpa [#allocation9], 1 }

</bundles_post_ra>
